<compile_context>
chip_gen: v7x
topology: tpu7x:2x2x1
jax: 0.10.0
libtpu: 0.0.40
codegen_flags: <defaults>
</compile_context>

<pallas_src>
import jax
import jax.numpy as jnp
from jax.experimental import pallas as pl
from jax.experimental.pallas import tpu as pltpu

LANE = 128
SUBLANE = 8


def _round_up(x, m):
    return (x + m - 1) // m * m


def mlp_kernel(x_ref,
               w_in_ref, b_in_ref,
               w_h1_ref, b_h1_ref,
               w_h2_ref, b_h2_ref,
               w_h3_ref, b_h3_ref,
               w_out_ref, b_out_ref,
               out_ref):
    # bf16 operands for the MXU, f32 accumulation; bias add + ReLU stay in f32.
    def layer(h_bf16, w_ref, b_ref, relu=True):
        y = jnp.dot(h_bf16, w_ref[...], preferred_element_type=jnp.float32)
        y = y + b_ref[...]
        if relu:
            y = jnp.maximum(y, 0.0)
        return y

    x = x_ref[...].astype(jnp.bfloat16)

    h = layer(x, w_in_ref, b_in_ref)
    # first_hidden applied twice, as in the PyTorch forward.
    h = layer(h.astype(jnp.bfloat16), w_h1_ref, b_h1_ref)
    h = layer(h.astype(jnp.bfloat16), w_h1_ref, b_h1_ref)
    h = layer(h.astype(jnp.bfloat16), w_h2_ref, b_h2_ref)
    h = layer(h.astype(jnp.bfloat16), w_h3_ref, b_h3_ref)
    out_ref[...] = layer(h.astype(jnp.bfloat16), w_out_ref, b_out_ref,
                         relu=False).astype(out_ref.dtype)


def _pad2(a, rows, cols, dtype):
    """Zero-pad a 2-D array up to (rows, cols) and cast."""
    r, c = a.shape
    return jnp.pad(a, ((0, rows - r), (0, cols - c))).astype(dtype)


def prepare_params(params):
    """Pad feature dims to lane width (128); weights -> bf16, biases -> f32."""
    in_dim, hidden = params["w_in"].shape
    n_out = params["w_out"].shape[1]
    hp = _round_up(hidden, LANE)
    op = _round_up(n_out, LANE)
    bf, f32 = jnp.bfloat16, jnp.float32
    return {
        "w_in":  _pad2(params["w_in"],  in_dim, hp, bf),
        "b_in":  _pad2(params["b_in"],  1,      hp, f32),
        "w_h1":  _pad2(params["w_h1"],  hp,     hp, bf),
        "b_h1":  _pad2(params["b_h1"],  1,      hp, f32),
        "w_h2":  _pad2(params["w_h2"],  hp,     hp, bf),
        "b_h2":  _pad2(params["b_h2"],  1,      hp, f32),
        "w_h3":  _pad2(params["w_h3"],  hp,     hp, bf),
        "b_h3":  _pad2(params["b_h3"],  1,      hp, f32),
        "w_out": _pad2(params["w_out"], hp,     op, bf),
        "b_out": _pad2(params["b_out"], 1,      op, f32),
    }


def _choose_batch_tile(B, max_tile, target_steps):
    """Batch tile: multiple of 8 sublanes, aiming for >= target_steps grid steps,
    capped so the double-buffered x/out tiles stay inside the scoped-VMEM default
    on every generation (v7x included)."""
    tb = _round_up(pl.cdiv(B, target_steps), SUBLANE)
    return max(SUBLANE, min(tb, max_tile))


def toxic_classifier_forward(inputs, params, *, max_tile_b=2048, target_steps=8,
                             out_dtype=jnp.float32):
    """inputs: (B, 1, max_seq_len*emb_dim) -> logits (B, n_out).

    `inputs` may be f32 or bf16 (the cast to the matmul dtype happens in-kernel,
    so feeding bf16 halves the dominant HBM read)."""
    x = jnp.squeeze(inputs, axis=1)
    B, in_dim = x.shape
    n_out = params["w_out"].shape[1]

    p = prepare_params(params)
    hp = p["w_in"].shape[1]
    op = p["w_out"].shape[1]

    tb = _choose_batch_tile(B, max_tile_b, target_steps)
    # Last block may be partial: out-of-range rows are row-independent garbage,
    # masked on the output write by Pallas boundary handling. No jnp.pad copy.
    grid = (pl.cdiv(B, tb),)

    x_spec = pl.BlockSpec((tb, in_dim), lambda i: (i, 0))
    out_spec = pl.BlockSpec((tb, op), lambda i: (i, 0))

    def resident(a):  # whole array, same block every step -> stays in VMEM
        return pl.BlockSpec(a.shape, lambda i: (0,) * a.ndim)

    args = (
        x,
        p["w_in"], p["b_in"],
        p["w_h1"], p["b_h1"],
        p["w_h2"], p["b_h2"],
        p["w_h3"], p["b_h3"],
        p["w_out"], p["b_out"],
    )
    in_specs = [x_spec] + [resident(a) for a in args[1:]]

    weight_bytes = sum(int(a.size) * a.dtype.itemsize for a in args[1:])
    cost = pl.CostEstimate(
        flops=2 * B * (in_dim * hp + 4 * hp * hp + hp * op),
        transcendentals=0,
        bytes_accessed=int(x.size) * x.dtype.itemsize
        + B * op * jnp.dtype(out_dtype).itemsize
        + weight_bytes,
    )

    out = pl.pallas_call(
        mlp_kernel,
        out_shape=jax.ShapeDtypeStruct((B, op), out_dtype),
        grid=grid,
        in_specs=in_specs,
        out_specs=out_spec,
        compiler_params=pltpu.CompilerParams(
            dimension_semantics=("parallel",)),
        cost_estimate=cost,
    )(*args)

    return out[:, :n_out]


def init_params(key, in_dim, hidden, n_out):
    """Deterministic synthetic parameters (weights as (in, out), biases as (1, out))."""
    ks = jax.random.split(key, 10)
    scale = 0.05

    def w(k, shape):
        return (scale * jax.random.normal(k, shape)).astype(jnp.float32)

    return {
        "w_in":  w(ks[0], (in_dim, hidden)), "b_in":  w(ks[1], (1, hidden)),
        "w_h1":  w(ks[2], (hidden, hidden)), "b_h1":  w(ks[3], (1, hidden)),
        "w_h2":  w(ks[4], (hidden, hidden)), "b_h2":  w(ks[5], (1, hidden)),
        "w_h3":  w(ks[6], (hidden, hidden)), "b_h3":  w(ks[7], (1, hidden)),
        "w_out": w(ks[8], (hidden, n_out)),  "b_out": w(ks[9], (1, n_out)),
    }


def reference_forward(inputs, p):
    """Pure-JAX f32 reference mirroring the PyTorch forward."""
    x = jnp.squeeze(inputs, axis=1).astype(jnp.float32)
    h = jax.nn.relu(x @ p["w_in"] + p["b_in"])
    h = jax.nn.relu(h @ p["w_h1"] + p["b_h1"])
    h = jax.nn.relu(h @ p["w_h1"] + p["b_h1"])   # first_hidden applied twice
    h = jax.nn.relu(h @ p["w_h2"] + p["b_h2"])
    h = jax.nn.relu(h @ p["w_h3"] + p["b_h3"])
    return h @ p["w_out"] + p["b_out"]


if __name__ == "__main__":
    # Small shapes consistent with the module: max_seq_len=8, emb_dim=32 -> in_dim=256
    batch, max_seq_len, emb_dim, hidden, n_out = 8, 8, 32, 64, 6
    in_dim = max_seq_len * emb_dim

    key = jax.random.PRNGKey(0)
    k_inp, k_par = jax.random.split(key)

    inputs = jax.random.normal(k_inp, (batch, 1, in_dim), dtype=jnp.float32)
    params = init_params(k_par, in_dim, hidden, n_out)

    out = toxic_classifier_forward(inputs, params)
    out = jax.block_until_ready(out)

    ref = reference_forward(inputs, params)
    assert out.shape == (batch, n_out), out.shape
    # bf16 matmul operands with f32 accumulation -> relaxed tolerance vs f32 ref.
    assert jnp.allclose(out, ref, atol=3e-2, rtol=3e-2), "mismatch vs reference"

    print("KERNEL_OK")
</pallas_src>

<mosaic_0001>
module attributes {stable_mosaic.version = 11 : i64} {
  func.func @mlp_kernel(%arg0: i32, %arg1: memref<8x256xf32, #tpu.memory_space<vmem>>, %arg2: memref<256x128xbf16, #tpu.memory_space<vmem>>, %arg3: memref<1x128xf32, #tpu.memory_space<vmem>>, %arg4: memref<128x128xbf16, #tpu.memory_space<vmem>>, %arg5: memref<1x128xf32, #tpu.memory_space<vmem>>, %arg6: memref<128x128xbf16, #tpu.memory_space<vmem>>, %arg7: memref<1x128xf32, #tpu.memory_space<vmem>>, %arg8: memref<128x128xbf16, #tpu.memory_space<vmem>>, %arg9: memref<1x128xf32, #tpu.memory_space<vmem>>, %arg10: memref<128x128xbf16, #tpu.memory_space<vmem>>, %arg11: memref<1x128xf32, #tpu.memory_space<vmem>>, %arg12: memref<8x128xf32, #tpu.memory_space<vmem>>) attributes {dimension_semantics = [#tpu.dimension_semantics<parallel>], iteration_bounds = array<i64: 1>, scalar_prefetch = 0 : i64, scratch_operands = 0 : i64, tpu.core_type = #tpu.core_type<tc>, window_params = [{transform_indices = @transform_0, window_bounds = array<i64: 8, 256>}, {pipeline_mode = #tpu.pipeline_mode<synchronous>, transform_indices = @transform_1, window_bounds = array<i64: 256, 128>}, {pipeline_mode = #tpu.pipeline_mode<synchronous>, transform_indices = @transform_2, window_bounds = array<i64: 1, 128>}, {pipeline_mode = #tpu.pipeline_mode<synchronous>, transform_indices = @transform_3, window_bounds = array<i64: 128, 128>}, {pipeline_mode = #tpu.pipeline_mode<synchronous>, transform_indices = @transform_4, window_bounds = array<i64: 1, 128>}, {pipeline_mode = #tpu.pipeline_mode<synchronous>, transform_indices = @transform_5, window_bounds = array<i64: 128, 128>}, {pipeline_mode = #tpu.pipeline_mode<synchronous>, transform_indices = @transform_6, window_bounds = array<i64: 1, 128>}, {pipeline_mode = #tpu.pipeline_mode<synchronous>, transform_indices = @transform_7, window_bounds = array<i64: 128, 128>}, {pipeline_mode = #tpu.pipeline_mode<synchronous>, transform_indices = @transform_8, window_bounds = array<i64: 1, 128>}, {pipeline_mode = #tpu.pipeline_mode<synchronous>, transform_indices = @transform_9, window_bounds = array<i64: 128, 128>}, {pipeline_mode = #tpu.pipeline_mode<synchronous>, transform_indices = @transform_10, window_bounds = array<i64: 1, 128>}, {transform_indices = @transform_11, window_bounds = array<i64: 8, 128>}]} {
    %c0 = arith.constant 0 : index
    %c0_0 = arith.constant 0 : index
    %0 = vector.load %arg1[%c0, %c0_0] : memref<8x256xf32, #tpu.memory_space<vmem>>, vector<8x256xf32>
    %1 = arith.truncf %0 : vector<8x256xf32> to vector<8x256xbf16>
    %c0_1 = arith.constant 0 : index
    %c0_2 = arith.constant 0 : index
    %2 = vector.load %arg2[%c0_1, %c0_2] : memref<256x128xbf16, #tpu.memory_space<vmem>>, vector<256x128xbf16>
    %cst = arith.constant dense<0.000000e+00> : vector<8x128xf32>
    %3 = tpu.matmul %1, %2, %cst {dimension_numbers = #tpu.dot_dimension_numbers<[1], [0], [0], [1], [0, 0, 1, 1], [], []>} : vector<8x256xbf16>, vector<256x128xbf16>, vector<8x128xf32> -> vector<8x128xf32>
    %c0_3 = arith.constant 0 : index
    %c0_4 = arith.constant 0 : index
    %4 = vector.load %arg3[%c0_3, %c0_4] : memref<1x128xf32, #tpu.memory_space<vmem>>, vector<1x128xf32>
    %5 = vector.broadcast %4 : vector<1x128xf32> to vector<8x128xf32>
    %6 = arith.addf %3, %5 : vector<8x128xf32>
    %cst_5 = arith.constant 0.000000e+00 : f32
    %7 = vector.broadcast %cst_5 : f32 to vector<8x128xf32>
    %8 = arith.maximumf %6, %7 : vector<8x128xf32>
    %9 = arith.truncf %8 : vector<8x128xf32> to vector<8x128xbf16>
    %c0_6 = arith.constant 0 : index
    %c0_7 = arith.constant 0 : index
    %10 = vector.load %arg4[%c0_6, %c0_7] : memref<128x128xbf16, #tpu.memory_space<vmem>>, vector<128x128xbf16>
    %cst_8 = arith.constant dense<0.000000e+00> : vector<8x128xf32>
    %11 = tpu.matmul %9, %10, %cst_8 {dimension_numbers = #tpu.dot_dimension_numbers<[1], [0], [0], [1], [0, 0, 1, 1], [], []>} : vector<8x128xbf16>, vector<128x128xbf16>, vector<8x128xf32> -> vector<8x128xf32>
    %c0_9 = arith.constant 0 : index
    %c0_10 = arith.constant 0 : index
    %12 = vector.load %arg5[%c0_9, %c0_10] : memref<1x128xf32, #tpu.memory_space<vmem>>, vector<1x128xf32>
    %13 = vector.broadcast %12 : vector<1x128xf32> to vector<8x128xf32>
    %14 = arith.addf %11, %13 : vector<8x128xf32>
    %cst_11 = arith.constant 0.000000e+00 : f32
    %15 = vector.broadcast %cst_11 : f32 to vector<8x128xf32>
    %16 = arith.maximumf %14, %15 : vector<8x128xf32>
    %17 = arith.truncf %16 : vector<8x128xf32> to vector<8x128xbf16>
    %c0_12 = arith.constant 0 : index
    %c0_13 = arith.constant 0 : index
    %18 = vector.load %arg4[%c0_12, %c0_13] : memref<128x128xbf16, #tpu.memory_space<vmem>>, vector<128x128xbf16>
    %cst_14 = arith.constant dense<0.000000e+00> : vector<8x128xf32>
    %19 = tpu.matmul %17, %18, %cst_14 {dimension_numbers = #tpu.dot_dimension_numbers<[1], [0], [0], [1], [0, 0, 1, 1], [], []>} : vector<8x128xbf16>, vector<128x128xbf16>, vector<8x128xf32> -> vector<8x128xf32>
    %c0_15 = arith.constant 0 : index
    %c0_16 = arith.constant 0 : index
    %20 = vector.load %arg5[%c0_15, %c0_16] : memref<1x128xf32, #tpu.memory_space<vmem>>, vector<1x128xf32>
    %21 = vector.broadcast %20 : vector<1x128xf32> to vector<8x128xf32>
    %22 = arith.addf %19, %21 : vector<8x128xf32>
    %cst_17 = arith.constant 0.000000e+00 : f32
    %23 = vector.broadcast %cst_17 : f32 to vector<8x128xf32>
    %24 = arith.maximumf %22, %23 : vector<8x128xf32>
    %25 = arith.truncf %24 : vector<8x128xf32> to vector<8x128xbf16>
    %c0_18 = arith.constant 0 : index
    %c0_19 = arith.constant 0 : index
    %26 = vector.load %arg6[%c0_18, %c0_19] : memref<128x128xbf16, #tpu.memory_space<vmem>>, vector<128x128xbf16>
    %cst_20 = arith.constant dense<0.000000e+00> : vector<8x128xf32>
    %27 = tpu.matmul %25, %26, %cst_20 {dimension_numbers = #tpu.dot_dimension_numbers<[1], [0], [0], [1], [0, 0, 1, 1], [], []>} : vector<8x128xbf16>, vector<128x128xbf16>, vector<8x128xf32> -> vector<8x128xf32>
    %c0_21 = arith.constant 0 : index
    %c0_22 = arith.constant 0 : index
    %28 = vector.load %arg7[%c0_21, %c0_22] : memref<1x128xf32, #tpu.memory_space<vmem>>, vector<1x128xf32>
    %29 = vector.broadcast %28 : vector<1x128xf32> to vector<8x128xf32>
    %30 = arith.addf %27, %29 : vector<8x128xf32>
    %cst_23 = arith.constant 0.000000e+00 : f32
    %31 = vector.broadcast %cst_23 : f32 to vector<8x128xf32>
    %32 = arith.maximumf %30, %31 : vector<8x128xf32>
    %33 = arith.truncf %32 : vector<8x128xf32> to vector<8x128xbf16>
    %c0_24 = arith.constant 0 : index
    %c0_25 = arith.constant 0 : index
    %34 = vector.load %arg8[%c0_24, %c0_25] : memref<128x128xbf16, #tpu.memory_space<vmem>>, vector<128x128xbf16>
    %cst_26 = arith.constant dense<0.000000e+00> : vector<8x128xf32>
    %35 = tpu.matmul %33, %34, %cst_26 {dimension_numbers = #tpu.dot_dimension_numbers<[1], [0], [0], [1], [0, 0, 1, 1], [], []>} : vector<8x128xbf16>, vector<128x128xbf16>, vector<8x128xf32> -> vector<8x128xf32>
    %c0_27 = arith.constant 0 : index
    %c0_28 = arith.constant 0 : index
    %36 = vector.load %arg9[%c0_27, %c0_28] : memref<1x128xf32, #tpu.memory_space<vmem>>, vector<1x128xf32>
    %37 = vector.broadcast %36 : vector<1x128xf32> to vector<8x128xf32>
    %38 = arith.addf %35, %37 : vector<8x128xf32>
    %cst_29 = arith.constant 0.000000e+00 : f32
    %39 = vector.broadcast %cst_29 : f32 to vector<8x128xf32>
    %40 = arith.maximumf %38, %39 : vector<8x128xf32>
    %41 = arith.truncf %40 : vector<8x128xf32> to vector<8x128xbf16>
    %c0_30 = arith.constant 0 : index
    %c0_31 = arith.constant 0 : index
    %42 = vector.load %arg10[%c0_30, %c0_31] : memref<128x128xbf16, #tpu.memory_space<vmem>>, vector<128x128xbf16>
    %cst_32 = arith.constant dense<0.000000e+00> : vector<8x128xf32>
    %43 = tpu.matmul %41, %42, %cst_32 {dimension_numbers = #tpu.dot_dimension_numbers<[1], [0], [0], [1], [0, 0, 1, 1], [], []>} : vector<8x128xbf16>, vector<128x128xbf16>, vector<8x128xf32> -> vector<8x128xf32>
    %c0_33 = arith.constant 0 : index
    %c0_34 = arith.constant 0 : index
    %44 = vector.load %arg11[%c0_33, %c0_34] : memref<1x128xf32, #tpu.memory_space<vmem>>, vector<1x128xf32>
    %45 = vector.broadcast %44 : vector<1x128xf32> to vector<8x128xf32>
    %46 = arith.addf %43, %45 : vector<8x128xf32>
    %c0_35 = arith.constant 0 : index
    %c0_36 = arith.constant 0 : index
    %47 = vector.load %arg12[%c0_35, %c0_36] : memref<8x128xf32, #tpu.memory_space<vmem>>, vector<8x128xf32>
    tpu.vector_store %arg12[%c0_35, %c0_36], %46 {strides = array<i32>} : memref<8x128xf32, #tpu.memory_space<vmem>>, vector<8x128xf32>,
    return
  }
  func.func @transform_0(%arg0: i32) -> (i32, i32) {
    %c0_i32 = arith.constant 0 : i32
    %c0_i32_0 = arith.constant 0 : i32
    return %arg0, %c0_i32 : i32, i32
  }
  func.func @transform_1(%arg0: i32) -> (i32, i32) {
    %c0_i32 = arith.constant 0 : i32
    %c0_i32_0 = arith.constant 0 : i32
    %c0_i32_1 = arith.constant 0 : i32
    return %c0_i32, %c0_i32_0 : i32, i32
  }
  func.func @transform_2(%arg0: i32) -> (i32, i32) {
    %c0_i32 = arith.constant 0 : i32
    %c0_i32_0 = arith.constant 0 : i32
    %c0_i32_1 = arith.constant 0 : i32
    return %c0_i32, %c0_i32_0 : i32, i32
  }
  func.func @transform_3(%arg0: i32) -> (i32, i32) {
    %c0_i32 = arith.constant 0 : i32
    %c0_i32_0 = arith.constant 0 : i32
    %c0_i32_1 = arith.constant 0 : i32
    return %c0_i32, %c0_i32_0 : i32, i32
  }
  func.func @transform_4(%arg0: i32) -> (i32, i32) {
    %c0_i32 = arith.constant 0 : i32
    %c0_i32_0 = arith.constant 0 : i32
    %c0_i32_1 = arith.constant 0 : i32
    return %c0_i32, %c0_i32_0 : i32, i32
  }
  func.func @transform_5(%arg0: i32) -> (i32, i32) {
    %c0_i32 = arith.constant 0 : i32
    %c0_i32_0 = arith.constant 0 : i32
    %c0_i32_1 = arith.constant 0 : i32
    return %c0_i32, %c0_i32_0 : i32, i32
  }
  func.func @transform_6(%arg0: i32) -> (i32, i32) {
    %c0_i32 = arith.constant 0 : i32
    %c0_i32_0 = arith.constant 0 : i32
    %c0_i32_1 = arith.constant 0 : i32
    return %c0_i32, %c0_i32_0 : i32, i32
  }
  func.func @transform_7(%arg0: i32) -> (i32, i32) {
    %c0_i32 = arith.constant 0 : i32
    %c0_i32_0 = arith.constant 0 : i32
    %c0_i32_1 = arith.constant 0 : i32
    return %c0_i32, %c0_i32_0 : i32, i32
  }
  func.func @transform_8(%arg0: i32) -> (i32, i32) {
    %c0_i32 = arith.constant 0 : i32
    %c0_i32_0 = arith.constant 0 : i32
    %c0_i32_1 = arith.constant 0 : i32
    return %c0_i32, %c0_i32_0 : i32, i32
  }
  func.func @transform_9(%arg0: i32) -> (i32, i32) {
    %c0_i32 = arith.constant 0 : i32
    %c0_i32_0 = arith.constant 0 : i32
    %c0_i32_1 = arith.constant 0 : i32
    return %c0_i32, %c0_i32_0 : i32, i32
  }
  func.func @transform_10(%arg0: i32) -> (i32, i32) {
    %c0_i32 = arith.constant 0 : i32
    %c0_i32_0 = arith.constant 0 : i32
    %c0_i32_1 = arith.constant 0 : i32
    return %c0_i32, %c0_i32_0 : i32, i32
  }
  func.func @transform_11(%arg0: i32) -> (i32, i32) {
    %c0_i32 = arith.constant 0 : i32
    %c0_i32_0 = arith.constant 0 : i32
    return %arg0, %c0_i32 : i32, i32
  }
}

</mosaic_0001>

<bundles_post_ra>
// kernel: tpu_custom_call.1
= control target key start
LH: loop header
LB: loop body
LE: loop exit
PB: predicated region body
PF: predicated region fallthrough
CT: control target
= control target key end

     0   :  { %16 = vsyncpa [#allocation3], 0  ;;  %s1490_s0 = inlined_call_operand.hbm [shape: f32[8,256], index: 0, kind: input, shape index: {}]   ;;  %s1491_s1 = inlined_call_operand.hbm [shape: bf16[256,128], index: 1, kind: input, shape index: {}]   ;;  %s1492_s2 = inlined_call_operand.vmem [shape: f32[1,128], index: 2, kind: input, shape index: {}]   ;;  %s1493_s3 = inlined_call_operand.hbm [shape: bf16[128,128], index: 3, kind: input, shape index: {}]   ;;  %s1494_s4 = inlined_call_operand.vmem [shape: f32[1,128], index: 4, kind: input, shape index: {}]   ;;  %s1495_s5 = inlined_call_operand.hbm [shape: bf16[128,128], index: 5, kind: input, shape index: {}]   ;;  %s1496_s6 = inlined_call_operand.vmem [shape: f32[1,128], index: 6, kind: input, shape index: {}]   ;;  %s1497_s7 = inlined_call_operand.hbm [shape: bf16[128,128], index: 7, kind: input, shape index: {}]   ;;  %s1498_s8 = inlined_call_operand.vmem [shape: f32[1,128], index: 8, kind: input, shape index: {}]   ;;  %s1499_s9 = inlined_call_operand.hbm [shape: bf16[128,128], index: 9, kind: input, shape index: {}]   ;;  %s1500_s10 = inlined_call_operand.vmem [shape: f32[1,128], index: 10, kind: input, shape index: {}]   ;;  %s1501_s11 = inlined_call_operand.hbm [shape: f32[8,128], index: 11, kind: output, shape index: {}]  }
   0x1   :  { %17 = vsyncpa [#allocation6], 0 }
   0x2   :  { %18 = vsyncpa [#allocation9], 0 }
   0x3   :  { %19 = vsyncpa [#allocation12], 0 }
   0x4   :  { %20 = vsyncpa [#allocation4], 0  ;;  %s1255_s17 = smov [#allocation5]   ;;  %s1091_s21 = scalar_lea.hbm %s1491_s1, 2048 }
   0x5   :  { %s36_s18 = sshll.u32 %s1255_s17, 4  ;;  %p1092_p0 = scmp.ne.s32.totalorder %s1491_s1, %s1091_s21  ;;  %s37_s18 = int_to_ptr.vmem [resolvable:$true] %s36_s18 }
   0x6   :  { %p1095_p1 = scmp.lt.u32.totalorder %s1091_s21, %s1491_s1 }
   0x8   :  { %p1097_p2 = pnand %p1095_p1, %p1092_p0 }
   0xa   :  { %1100 = shalt.err (!%p1097_p2)
}
   0xb   :  { %s1101_s26 = scalar_lea.vmem %s37_s18, 2048  ;;  %p1106_p4 = scmp.lt.s32.totalorder %s37_s18, %s37_s18 }
   0xc   :  { %p1102_p3 = scmp.ne.s32.totalorder %s37_s18, %s1101_s26  ;;  %p1107_p5 = scmp.lt.s32.totalorder %s1101_s26, %s1101_s26 }
   0xe   :  { %p1108_p6 = por %p1107_p5, %p1106_p4 }
  0x10   :  { %p1109_p7 = pnand %p1108_p6, %p1102_p3 }
  0x12   :  { %1112 = shalt.err (!%p1109_p7)
}
  0x13   :  { %s1256_s27 = smov 64   ;;  %s1257_s28 = smov 4  }
  0x14   :  { %42 = dma.hbm_to_vmem [thread:$0]  %s1491_s1, 2048, %s37_s18, [#allocation6], %s1256_s27, %s1256_s27, %s1257_s28  }
  0x15   :  { %s1258_s12 = smov [#allocation8]   ;;  %s1259_s14 = smov [#allocation2]  }
  0x16   :  { %s64_s13 = sshll.u32 %s1258_s12, 4  ;;  %s27_s15 = sshll.u32 %s1259_s14, 4  ;;  %s65_s13 = int_to_ptr.vmem [resolvable:$true] %s64_s13  ;;  %s28_s15 = int_to_ptr.vmem [resolvable:$true] %s27_s15 }
  0x17   :  { %s1113_s19 = scalar_lea.hbm %s1495_s5, 1024 }
  0x18   :  { %p1114_p8 = scmp.ne.s32.totalorder %s1495_s5, %s1113_s19  ;;  %p1117_p9 = scmp.lt.u32.totalorder %s1113_s19, %s1495_s5 }
  0x1a   :  { %p1119_p10 = pnand %p1117_p9, %p1114_p8 }
  0x1c   :  { %1122 = shalt.err (!%p1119_p10)
}
  0x1d   :  { %s1123_s1 = scalar_lea.vmem %s65_s13, 1024  ;;  %p1128_p12 = scmp.lt.s32.totalorder %s65_s13, %s65_s13 }
  0x1e   :  { %p1124_p11 = scmp.ne.s32.totalorder %s65_s13, %s1123_s1  ;;  %p1129_p13 = scmp.lt.s32.totalorder %s1123_s1, %s1123_s1 }
  0x20   :  { %p1130_p0 = por %p1129_p13, %p1128_p12 }
  0x22   :  { %p1131_p1 = pnand %p1130_p0, %p1124_p11 }
  0x24   :  { %1134 = shalt.err (!%p1131_p1)
}
  0x25   :  { %70 = dma.hbm_to_vmem [thread:$0]  %s1495_s5, 1024, %s65_s13, [#allocation9], %s1256_s27, %s1256_s27, %s1257_s28  }
  0x26   :  { %s1135_s29 = scalar_lea.hbm %s1490_s0, 256 }
  0x27   :  { %p1136_p2 = scmp.ne.s32.totalorder %s1490_s0, %s1135_s29  ;;  %p1139_p3 = scmp.lt.u32.totalorder %s1135_s29, %s1490_s0 }
  0x29   :  { %p1141_p4 = pnand %p1139_p3, %p1136_p2 }
  0x2b   :  { %1144 = shalt.err (!%p1141_p4)
}
  0x2c   :  { %s1145_s17 = scalar_lea.vmem %s28_s15, 256  ;;  %p1150_p6 = scmp.lt.s32.totalorder %s28_s15, %s28_s15 }
  0x2d   :  { %p1146_p5 = scmp.ne.s32.totalorder %s28_s15, %s1145_s17  ;;  %p1151_p7 = scmp.lt.s32.totalorder %s1145_s17, %s1145_s17 }
  0x2f   :  { %p1152_p8 = por %p1151_p7, %p1150_p6 }
  0x31   :  { %p1153_p9 = pnand %p1152_p8, %p1146_p5 }
  0x33   :  { %1156 = shalt.err (!%p1153_p9)
}
  0x34   :  { %30 = dma.hbm_to_vmem [thread:$0]  %s1490_s0, 256, %s28_s15, [#allocation3]  }
  0x35   :  { %s1260_s19 = smov [#allocation7]   ;;  %s1261_s21 = smov [#allocation10]  }
  0x36   :  { %s50_s20 = sshll.u32 %s1260_s19, 4  ;;  %s78_s22 = sshll.u32 %s1261_s21, 4  ;;  %s51_s20 = int_to_ptr.vmem [resolvable:$true] %s50_s20  ;;  %s79_s22 = int_to_ptr.vmem [resolvable:$true] %s78_s22 }
  0x37   :  { %s1157_s18 = scalar_lea.hbm %s1493_s3, 1024 }
  0x38   :  { %p1158_p10 = scmp.ne.s32.totalorder %s1493_s3, %s1157_s18  ;;  %p1161_p11 = scmp.lt.u32.totalorder %s1157_s18, %s1493_s3 }
  0x3a   :  { %p1163_p12 = pnand %p1161_p11, %p1158_p10 }
  0x3c   :  { %1166 = shalt.err (!%p1163_p12)
}
  0x3d   :  { %s1167_s0 = scalar_lea.vmem %s51_s20, 1024  ;;  %p1172_p0 = scmp.lt.s32.totalorder %s51_s20, %s51_s20 }
  0x3e   :  { %p1168_p13 = scmp.ne.s32.totalorder %s51_s20, %s1167_s0  ;;  %p1173_p1 = scmp.lt.s32.totalorder %s1167_s0, %s1167_s0 }
  0x40   :  { %p1174_p2 = por %p1173_p1, %p1172_p0 }
  0x42   :  { %p1175_p3 = pnand %p1174_p2, %p1168_p13 }
  0x44   :  { %1178 = shalt.err (!%p1175_p3)
}
  0x45   :  { %56 = dma.hbm_to_vmem [thread:$0]  %s1493_s3, 1024, %s51_s20, [#allocation6], %s1256_s27, %s1256_s27, %s1257_s28  }
  0x46   :  { %s1179_s16 = scalar_lea.hbm %s1497_s7, 1024 }
  0x47   :  { %p1180_p4 = scmp.ne.s32.totalorder %s1497_s7, %s1179_s16  ;;  %p1183_p5 = scmp.lt.u32.totalorder %s1179_s16, %s1497_s7 }
  0x49   :  { %p1185_p6 = pnand %p1183_p5, %p1180_p4 }
  0x4b   :  { %1188 = shalt.err (!%p1185_p6)
}
  0x4c   :  { %s1189_s21 = scalar_lea.vmem %s79_s22, 1024  ;;  %p1194_p8 = scmp.lt.s32.totalorder %s79_s22, %s79_s22 }
  0x4d   :  { %p1190_p7 = scmp.ne.s32.totalorder %s79_s22, %s1189_s21  ;;  %p1195_p9 = scmp.lt.s32.totalorder %s1189_s21, %s1189_s21 }
  0x4f   :  { %p1196_p10 = por %p1195_p9, %p1194_p8 }
  0x51   :  { %p1197_p11 = pnand %p1196_p10, %p1190_p7 }
  0x53   :  { %1200 = shalt.err (!%p1197_p11)
}
  0x54   :  { %84 = dma.hbm_to_vmem [thread:$0]  %s1497_s7, 1024, %s79_s22, [#allocation9], %s1256_s27, %s1256_s27, %s1257_s28  }
  0x55   :  { %s1262_s23 = smov [#allocation11]   ;;  %s1201_s25 = scalar_lea.hbm %s1499_s9, 1024 }
  0x56   :  { %s92_s1 = sshll.u32 %s1262_s23, 4  ;;  %p1202_p12 = scmp.ne.s32.totalorder %s1499_s9, %s1201_s25  ;;  %s93_s1 = int_to_ptr.vmem [resolvable:$true] %s92_s1 }
  0x57   :  { %p1205_p13 = scmp.lt.u32.totalorder %s1201_s25, %s1499_s9 }
  0x59   :  { %p1207_p0 = pnand %p1205_p13, %p1202_p12 }
  0x5b   :  { %1210 = shalt.err (!%p1207_p0)
}
  0x5c   :  { %s1211_s30 = scalar_lea.vmem %s93_s1, 1024  ;;  %p1216_p2 = scmp.lt.s32.totalorder %s93_s1, %s93_s1 }
  0x5d   :  { %p1212_p1 = scmp.ne.s32.totalorder %s93_s1, %s1211_s30  ;;  %p1217_p3 = scmp.lt.s32.totalorder %s1211_s30, %s1211_s30 }
  0x5f   :  { %p1218_p4 = por %p1217_p3, %p1216_p2 }
  0x61   :  { %p1219_p5 = pnand %p1218_p4, %p1212_p1 }
  0x63   :  { %1222 = shalt.err (!%p1219_p5)
}
  0x64   :  { %98 = dma.hbm_to_vmem [thread:$0]  %s1499_s9, 1024, %s93_s1, [#allocation12], %s1256_s27, %s1256_s27, %s1257_s28  }
  0x65   :  { %1245 = dma.done.wait [#allocation3], 256  }
  0x66   :  { %1246 = vsyncadd [#allocation3], 4294967040 }
  0x67   :  { %1247 = dma.done.wait [#allocation6], 3072  }
  0x68   :  { %1248 = vsyncadd [#allocation6], 4294964224 }
  0x69   :  { %1249 = dma.done.wait [#allocation9], 2048  }
  0x6a   :  { %1250 = vsyncadd [#allocation9], 4294965248 }
  0x6b   :  { %1251 = dma.done.wait [#allocation12], 1024  }
  0x6c   :  { %1252 = vsyncadd [#allocation12], 4294966272  ;;  %v1263_v0 = vmov 0.0   ;;  %v1043_v1 = vld [vmem:[#allocation5 + $0x40] sm:$0xff]   ;;  %v1045_v3 = vld [vmem:[#allocation5 + $0x48] sm:$0xff]   ;;  %vm1264_vm0 = vmmov 0  }
  0x6d   :  { %932 = vmatprep.subr.bf16.mxu1 %v1263_v0  ;;  %v1044_v2 = vld [vmem:[#allocation5] sm:$0xff]   ;;  %865 = vmatprep.subr.bf16.mxu0 %v1043_v1  ;;  %v1046_v4 = vld [vmem:[#allocation5 + $0x8] sm:$0xff]   ;;  %v1047_v5 = vld [vmem:[#allocation5 + $0x50] sm:$0xff]   ;;  %s1265_s5 = smov [#allocation13]  }
  0x6e   :  { %866 = vmatpush3.bf16.msra.mxu0 %v1044_v2  ;;  %v1048_v6 = vld [vmem:[#allocation5 + $0x10] sm:$0xff]   ;;  %v1049_v7 = vld [vmem:[#allocation5 + $0x58] sm:$0xff]   ;;  %v1051_v9 = vld [vmem:[#allocation5 + $0x60] sm:$0xff]   ;;  %948 = vmatprep.mubr.msk.bf16.mxu1 %vm1264_vm0, %v1263_v0  ;;  %s800_s13 = sshll.u32 %s1265_s5, 4  ;;  %s801_s13 = int_to_ptr.vmem [resolvable:$true] %s800_s13 }
  0x6f   :  { %867 = vmatprep.subr.bf16.mxu0 %v1045_v3  ;;  %v1050_v8 = vld [vmem:[#allocation5 + $0x18] sm:$0xff]   ;;  %v1052_v10 = vld [vmem:[#allocation5 + $0x20] sm:$0xff]   ;;  %v1053_v11 = vld [vmem:[#allocation5 + $0x68] sm:$0xff]   ;;  %p1228_p7 = scmp.lt.s32.totalorder %s801_s13, %s801_s13 }
  0x70   :  { %v121_v12 = vld [vmem:[#allocation2 + $0x8] sm:$0xff]  ;;  %v1059_v14 = vld [vmem:[#allocation7] sm:$0xff]   ;;  %v1054_v15 = vld [vmem:[#allocation5 + $0x28] sm:$0xff]  }
  0x71   :  { %v123_v13 = vpack.c.bf16 %v121_v12, %v121_v12  ;;  %v1055_v16 = vld [vmem:[#allocation5 + $0x70] sm:$0xff]   ;;  %933 = vmatpush3.bf16.msra.mxu1 %v1059_v14  ;;  %v1060_v17 = vld [vmem:[#allocation7 + $0x8] sm:$0xff]   ;;  %v1057_v19 = vld [vmem:[#allocation5 + $0x78] sm:$0xff]  }
  0x72   :  { %868 = vmatpush3.bf16.msra.mxu0 %v1046_v4  ;;  %v1056_v18 = vld [vmem:[#allocation5 + $0x30] sm:$0xff]   ;;  %934 = vmatprep.subr.bf16.mxu1 %v1263_v0  ;;  %v1058_v21 = vld [vmem:[#allocation5 + $0x38] sm:$0xff]   ;;  %v1063_v25 = vld [vmem:[#allocation7 + $0x20] sm:$0xff]  }
  0x73   :  { %869 = vmatprep.subr.bf16.mxu0 %v1047_v5  ;;  %291 = vmatprep.mubr.bf16.mxu0 %v123_v13  ;;  %v1061_v20 = vld [vmem:[#allocation7 + $0x10] sm:$0xff]   ;;  %v1062_v23 = vld [vmem:[#allocation7 + $0x18] sm:$0xff]   ;;  %v1064_v26 = vld [vmem:[#allocation7 + $0x28] sm:$0xff]  }
  0x74   :  { %v120_v22 = vld [vmem:[#allocation2] sm:$0xff]  ;;  %v1066_v28 = vld [vmem:[#allocation7 + $0x38] sm:$0xff]   ;;  %v1067_v38 = vld [vmem:[#allocation8] sm:$0xff]  }
  0x75   :  { %935 = vmatpush3.bf16.msra.mxu1 %v1060_v17  ;;  %v122_v24 = vpack.c.bf16 %v120_v22, %v120_v22  ;;  %v1065_v27 = vld [vmem:[#allocation7 + $0x30] sm:$0xff]   ;;  %v1068_v39 = vld [vmem:[#allocation8 + $0x8] sm:$0xff]   ;;  %v1070_v41 = vld [vmem:[#allocation8 + $0x18] sm:$0xff]  }
  0x76   :  { %870 = vmatpush3.bf16.msra.mxu0 %v1048_v6  ;;  %936 = vmatprep.subr.bf16.mxu1 %v1263_v0  ;;  %v812_v30 = vld [vmem:[%s1492_s2] ss:$0 sm:$0xff]  ;;  %v1071_v42 = vld [vmem:[#allocation8 + $0x20] sm:$0xff]   ;;  %v1072_v43 = vld [vmem:[#allocation8 + $0x28] sm:$0xff]  }
  0x77   :  { %871 = vmatprep.subr.bf16.mxu0 %v1049_v7  ;;  %v1069_v40 = vld [vmem:[#allocation8 + $0x10] sm:$0xff]   ;;  %v1074_v53 = vld [vmem:[#allocation8 + $0x38] sm:$0xff]   ;;  %v1075_v54 = vld [vmem:[#allocation10] sm:$0xff]  }
  0x78   :  { %v829_v44 = vld [vmem:[%s1494_s4] ss:$0 sm:$0xff]  ;;  %v1076_v55 = vld [vmem:[#allocation10 + $0x8] sm:$0xff]   ;;  %v1078_v57 = vld [vmem:[#allocation10 + $0x18] sm:$0xff]  }
  0x79   :  { %937 = vmatpush3.bf16.msra.mxu1 %v1061_v20  ;;  %v1073_v52 = vld [vmem:[#allocation8 + $0x30] sm:$0xff]   ;;  %v1079_v58 = vld [vmem:[#allocation10 + $0x20] sm:$0xff]   ;;  %v1080_v59 = vld [vmem:[#allocation10 + $0x28] sm:$0xff]  }
  0x7a   :  { %872 = vmatpush3.bf16.msra.mxu0 %v1050_v8  ;;  %938 = vmatprep.subr.bf16.mxu1 %v1263_v0  ;;  %v1077_v56 = vld [vmem:[#allocation10 + $0x10] sm:$0xff]   ;;  %v1082_v5 = vld [vmem:[#allocation10 + $0x38] sm:$0xff]   ;;  %v1083_v6 = vld [vmem:[#allocation11] sm:$0xff]  }
  0x7b   :  { %873 = vmatprep.subr.bf16.mxu0 %v1051_v9  ;;  %v1081_v4 = vld [vmem:[#allocation10 + $0x30] sm:$0xff]   ;;  %v1084_v7 = vld [vmem:[#allocation11 + $0x8] sm:$0xff]   ;;  %v1086_v9 = vld [vmem:[#allocation11 + $0x18] sm:$0xff]  }
  0x7c   :  { %v1085_v8 = vld [vmem:[#allocation11 + $0x10] sm:$0xff]  }
  0x7d   :  { %939 = vmatpush3.bf16.msra.mxu1 %v1062_v23  ;;  %v838_v12 = vld [vmem:[%s1496_s6] ss:$0 sm:$0xff] }
  0x7e   :  { %874 = vmatpush3.bf16.msra.mxu0 %v1052_v10  ;;  %940 = vmatprep.subr.bf16.mxu1 %v1263_v0  ;;  %v1087_v10 = vld [vmem:[#allocation11 + $0x20] sm:$0xff]   ;;  %v847_v22 = vld [vmem:[%s1498_s8] ss:$0 sm:$0xff]  ;;  %s1223_s8 = scalar_lea.vmem %s801_s13, 128 }
  0x7f   :  { %875 = vmatprep.subr.bf16.mxu0 %v1053_v11  ;;  %v1088_v11 = vld [vmem:[#allocation11 + $0x28] sm:$0xff]   ;;  %p1224_p6 = scmp.ne.s32.totalorder %s801_s13, %s1223_s8  ;;  %p1229_p8 = scmp.lt.s32.totalorder %s1223_s8, %s1223_s8 }
  0x81   :  { %941 = vmatpush3.bf16.msra.mxu1 %v1063_v25  ;;  %p1230_p9 = por %p1229_p8, %p1228_p7 }
  0x82   :  { %876 = vmatpush3.bf16.msra.mxu0 %v1054_v15  ;;  %942 = vmatprep.subr.bf16.mxu1 %v1263_v0 }
  0x83   :  { %877 = vmatprep.subr.bf16.mxu0 %v1055_v16  ;;  %p1231_p10 = pnand %p1230_p9, %p1224_p6 }
  0x85   :  { %943 = vmatpush3.bf16.msra.mxu1 %v1064_v26 }
  0x86   :  { %878 = vmatpush3.bf16.msra.mxu0 %v1056_v18  ;;  %944 = vmatprep.subr.bf16.mxu1 %v1263_v0 }
  0x87   :  { %879 = vmatprep.subr.bf16.mxu0 %v1057_v19 }
  0x89   :  { %945 = vmatpush3.bf16.msra.mxu1 %v1065_v27 }
  0x8a   :  { %880 = vmatpush3.bf16.msra.mxu0 %v1058_v21  ;;  %946 = vmatprep.subr.bf16.mxu1 %v1263_v0  ;;  %v1090_v21 = vld [vmem:[#allocation11 + $0x38] sm:$0xff]  }
  0x8b   :  { %952 = vmatprep.subr.bf16.mxu0 %v1263_v0 }
  0x8d   :  { %292 = vmatmul.mubr.bf16.vlgmr.msra.gmra.mrb[0].mxu0 %v122_v24  ;;  %947 = vmatpush3.bf16.msra.mxu1 %v1066_v28 }
  0x8e   :  { %953 = vmatpush3.bf16.msra.mxu0 %v1059_v14  ;;  %972 = vmatprep.subr.bf16.mxu1 %v1263_v0 }
  0x8f   :  { %954 = vmatprep.subr.bf16.mxu0 %v1263_v0  ;;  %968 = vmatprep.mubr.msk.bf16.mxu0 %vm1264_vm0, %v1263_v0 }
  0x92   :  { %955 = vmatpush3.bf16.msra.mxu0 %v1060_v17 }
  0x93   :  { %956 = vmatprep.subr.bf16.mxu0 %v1263_v0 }
  0x96   :  { %957 = vmatpush3.bf16.msra.mxu0 %v1061_v20  ;;  %v1089_v20 = vld [vmem:[#allocation11 + $0x30] sm:$0xff]  }
  0x97   :  { %958 = vmatprep.subr.bf16.mxu0 %v1263_v0 }
  0x9a   :  { %959 = vmatpush3.bf16.msra.mxu0 %v1062_v23 }
  0x9b   :  { %960 = vmatprep.subr.bf16.mxu0 %v1263_v0 }
  0x9e   :  { %961 = vmatpush3.bf16.msra.mxu0 %v1063_v25 }
  0x9f   :  { %962 = vmatprep.subr.bf16.mxu0 %v1263_v0 }
  0xa2   :  { %963 = vmatpush3.bf16.msra.mxu0 %v1064_v26 }
  0xa3   :  { %964 = vmatprep.subr.bf16.mxu0 %v1263_v0 }
  0xa6   :  { %965 = vmatpush3.bf16.msra.mxu0 %v1065_v27 }
  0xa7   :  { %966 = vmatprep.subr.bf16.mxu0 %v1263_v0 }
  0xaa   :  { %967 = vmatpush3.bf16.msra.mxu0 %v1066_v28 }
  0xab   :  { %992 = vmatprep.subr.bf16.mxu0 %v1263_v0 }
 0x160   :  { %v881_v29 = vpop.f32.mrb[0].mxu0 }
 0x161   :  { %v882_v31 = vpop.f32.mrb[1].mxu0 }
 0x162   :  { %v883_v32 = vadd.f32 %v882_v31, %v881_v29  ;;  %v884_v33 = vpop.f32.mrb[2].mxu0 }
 0x163   :  { %v885_v34 = vpop.f32.mrb[3].mxu0 }
 0x164   :  { %v294_v35 = vadd.f32 %v883_v32, %v812_v30  ;;  %v856_v30 = vld [vmem:[%s1500_s10] ss:$0 sm:$0xff] }
 0x166   :  { %v299_v36 = vmax.f32 %v294_v35, 0.0 }
 0x168   :  { %v300_v37 = vpack.c.bf16 %v299_v36, %v299_v36 }
 0x16a   :  { %949 = vmatmul.mubr.bf16.vlgmr.msra.gmra.mrb[0].mxu1 %v300_v37 }
 0x16b   :  { %988 = vmatprep.mubr.msk.bf16.mxu1 %vm1264_vm0, %v1263_v0  ;;  %973 = vmatpush3.bf16.msra.mxu1 %v1067_v38 }
 0x16c   :  { %974 = vmatprep.subr.bf16.mxu1 %v1263_v0 }
 0x16f   :  { %975 = vmatpush3.bf16.msra.mxu1 %v1068_v39 }
 0x170   :  { %976 = vmatprep.subr.bf16.mxu1 %v1263_v0 }
 0x173   :  { %977 = vmatpush3.bf16.msra.mxu1 %v1069_v40 }
 0x174   :  { %978 = vmatprep.subr.bf16.mxu1 %v1263_v0 }
 0x177   :  { %979 = vmatpush3.bf16.msra.mxu1 %v1070_v41 }
 0x178   :  { %980 = vmatprep.subr.bf16.mxu1 %v1263_v0 }
 0x17b   :  { %981 = vmatpush3.bf16.msra.mxu1 %v1071_v42 }
 0x17c   :  { %982 = vmatprep.subr.bf16.mxu1 %v1263_v0 }
 0x17f   :  { %983 = vmatpush3.bf16.msra.mxu1 %v1072_v43 }
 0x180   :  { %984 = vmatprep.subr.bf16.mxu1 %v1263_v0 }
 0x183   :  { %985 = vmatpush3.bf16.msra.mxu1 %v1073_v52 }
 0x184   :  { %986 = vmatprep.subr.bf16.mxu1 %v1263_v0 }
 0x187   :  { %987 = vmatpush3.bf16.msra.mxu1 %v1074_v53 }
 0x188   :  { %1012 = vmatprep.subr.bf16.mxu1 %v1263_v0 }
 0x23d   :  { %v406_v45 = vpop.f32.mrb[0].mxu1 }
 0x23e   :  { %v407_v46 = vadd.f32 %v829_v44, %v406_v45  ;;  %v950_v47 = vpop.f32.mrb[1].mxu1 }
 0x23f   :  { %v409_v48 = vpop.f32.mrb[2].mxu1 }
 0x240   :  { %v412_v49 = vmax.f32 %v407_v46, 0.0  ;;  %v951_v50 = vpop.f32.mrb[3].mxu1 }
 0x242   :  { %v413_v51 = vpack.c.bf16 %v412_v49, %v412_v49 }
 0x244   :  { %969 = vmatmul.mubr.bf16.vlgmr.msra.gmra.mrb[4].mxu0 %v413_v51 }
 0x245   :  { %1008 = vmatprep.mubr.msk.bf16.mxu0 %vm1264_vm0, %v1263_v0  ;;  %993 = vmatpush3.bf16.msra.mxu0 %v1075_v54 }
 0x246   :  { %994 = vmatprep.subr.bf16.mxu0 %v1263_v0 }
 0x249   :  { %995 = vmatpush3.bf16.msra.mxu0 %v1076_v55 }
 0x24a   :  { %996 = vmatprep.subr.bf16.mxu0 %v1263_v0 }
 0x24d   :  { %997 = vmatpush3.bf16.msra.mxu0 %v1077_v56 }
 0x24e   :  { %998 = vmatprep.subr.bf16.mxu0 %v1263_v0 }
 0x251   :  { %999 = vmatpush3.bf16.msra.mxu0 %v1078_v57 }
 0x252   :  { %1000 = vmatprep.subr.bf16.mxu0 %v1263_v0 }
 0x255   :  { %1001 = vmatpush3.bf16.msra.mxu0 %v1079_v58 }
 0x256   :  { %1002 = vmatprep.subr.bf16.mxu0 %v1263_v0 }
 0x259   :  { %1003 = vmatpush3.bf16.msra.mxu0 %v1080_v59 }
 0x25a   :  { %1004 = vmatprep.subr.bf16.mxu0 %v1263_v0 }
 0x25d   :  { %1005 = vmatpush3.bf16.msra.mxu0 %v1081_v4 }
 0x25e   :  { %1006 = vmatprep.subr.bf16.mxu0 %v1263_v0 }
 0x261   :  { %1007 = vmatpush3.bf16.msra.mxu0 %v1082_v5 }
 0x317   :  { %v448_v60 = vpop.f32.mrb[4].mxu0 }
 0x318   :  { %v449_v61 = vadd.f32 %v829_v44, %v448_v60  ;;  %v970_v62 = vpop.f32.mrb[5].mxu0 }
 0x319   :  { %v451_v63 = vpop.f32.mrb[6].mxu0 }
 0x31a   :  { %v454_v1 = vmax.f32 %v449_v61, 0.0  ;;  %v971_v2 = vpop.f32.mrb[7].mxu0 }
 0x31c   :  { %v455_v3 = vpack.c.bf16 %v454_v1, %v454_v1 }
 0x31e   :  { %989 = vmatmul.mubr.bf16.vlgmr.msra.gmra.mrb[4].mxu1 %v455_v3 }
 0x31f   :  { %1028 = vmatprep.mubr.msk.bf16.mxu1 %vm1264_vm0, %v1263_v0  ;;  %1013 = vmatpush3.bf16.msra.mxu1 %v1083_v6 }
 0x320   :  { %1014 = vmatprep.subr.bf16.mxu1 %v1263_v0 }
 0x323   :  { %1015 = vmatpush3.bf16.msra.mxu1 %v1084_v7 }
 0x324   :  { %1016 = vmatprep.subr.bf16.mxu1 %v1263_v0 }
 0x327   :  { %1017 = vmatpush3.bf16.msra.mxu1 %v1085_v8 }
 0x328   :  { %1018 = vmatprep.subr.bf16.mxu1 %v1263_v0 }
 0x32b   :  { %1019 = vmatpush3.bf16.msra.mxu1 %v1086_v9 }
 0x32c   :  { %1020 = vmatprep.subr.bf16.mxu1 %v1263_v0 }
 0x32f   :  { %1021 = vmatpush3.bf16.msra.mxu1 %v1087_v10 }
 0x330   :  { %1022 = vmatprep.subr.bf16.mxu1 %v1263_v0 }
 0x333   :  { %1023 = vmatpush3.bf16.msra.mxu1 %v1088_v11 }
 0x334   :  { %1024 = vmatprep.subr.bf16.mxu1 %v1263_v0 }
 0x337   :  { %1025 = vmatpush3.bf16.msra.mxu1 %v1089_v20 }
 0x338   :  { %1026 = vmatprep.subr.bf16.mxu1 %v1263_v0 }
 0x33b   :  { %1027 = vmatpush3.bf16.msra.mxu1 %v1090_v21 }
 0x3f1   :  { %v561_v13 = vpop.f32.mrb[4].mxu1 }
 0x3f2   :  { %v562_v14 = vadd.f32 %v838_v12, %v561_v13  ;;  %v990_v15 = vpop.f32.mrb[5].mxu1 }
 0x3f3   :  { %v564_v16 = vpop.f32.mrb[6].mxu1 }
 0x3f4   :  { %v567_v17 = vmax.f32 %v562_v14, 0.0  ;;  %v991_v18 = vpop.f32.mrb[7].mxu1 }
 0x3f6   :  { %v568_v19 = vpack.c.bf16 %v567_v17, %v567_v17 }
 0x3f8   :  { %1009 = vmatmul.mubr.bf16.vlgmr.msra.gmra.mrb[8].mxu0 %v568_v19 }
 0x4cb   :  { %v674_v23 = vpop.f32.mrb[8].mxu0 }
 0x4cc   :  { %v675_v24 = vadd.f32 %v847_v22, %v674_v23  ;;  %v1010_v25 = vpop.f32.mrb[9].mxu0 }
 0x4cd   :  { %v677_v26 = vpop.f32.mrb[10].mxu0 }
 0x4ce   :  { %v680_v27 = vmax.f32 %v675_v24, 0.0  ;;  %v1011_v28 = vpop.f32.mrb[11].mxu0 }
 0x4d0   :  { %v681_v29 = vpack.c.bf16 %v680_v27, %v680_v27 }
 0x4d2   :  { %1029 = vmatmul.mubr.bf16.vlgmr.msra.gmra.mrb[8].mxu1 %v681_v29 }
 0x5a5   :  { %v787_v0 = vpop.f32.mrb[8].mxu1 }
 0x5a6   :  { %v788_v31 = vadd.f32 %v856_v30, %v787_v0  ;;  %v1030_v32 = vpop.f32.mrb[9].mxu1 }
 0x5a7   :  { %v790_v33 = vpop.f32.mrb[10].mxu1 }
 0x5a8   :  { %793 = vst [vmem:[#allocation13] sm:$0xff] %v788_v31  ;;  %v1031_v34 = vpop.f32.mrb[11].mxu1 }
 0x5a9   :  { %1234 = shalt.err (!%p1231_p10)
}
 0x5aa   :  { %s1235_s10 = scalar_lea.hbm %s1501_s11, 128 }
 0x5ab   :  { %p1236_p11 = scmp.ne.s32.totalorder %s1501_s11, %s1235_s10  ;;  %p1239_p12 = scmp.lt.u32.totalorder %s1235_s10, %s1501_s11 }
 0x5ad   :  { %p1241_p13 = pnand %p1239_p12, %p1236_p11 }
 0x5af   :  { %1244 = shalt.err (!%p1241_p13)
}
 0x5b0   :  { %803 = dma.vmem_to_hbm [thread:$0]  %s801_s13, 128, %s1501_s11, [#allocation4]  }
 0x5b1   :  { %1253 = dma.done.wait [#allocation4], 128  }
 0x5b2   :  { %1254 = vsyncadd [#allocation4], 4294967168 }
 0x5b3   :  { %807 = vsyncpa [#allocation3], 1 }
 0x5b4   :  { %808 = vsyncpa [#allocation6], 1 }
 0x5b5   :  { %809 = vsyncpa [#allocation9], 1 }
 0x5b6   :  { %810 = vsyncpa [#allocation12], 1 }
 0x5b7   :  { %811 = vsyncpa [#allocation4], 1 }

</bundles_post_ra>
